<compile_context>
chip_gen: v6e
topology: v6e:2x2x1
jax: 0.10.0
libtpu: 0.0.40
codegen_flags: <defaults>
</compile_context>

<pallas_src>
import functools
import math

import jax
import jax.numpy as jnp
import numpy as np
from jax.experimental import pallas as pl
from jax.experimental.pallas import tpu as pltpu


# ----------------------------------------------------------------------------
# Generic tiled kernels
# ----------------------------------------------------------------------------

def _linear_kernel(*refs, activation, has_bias):
    if has_bias:
        x_ref, w_ref, b_ref, o_ref = refs
    else:
        x_ref, w_ref, o_ref = refs
        b_ref = None
    acc = jnp.dot(x_ref[...].astype(w_ref.dtype), w_ref[...],
                  preferred_element_type=jnp.float32)
    if b_ref is not None:
        acc = acc + b_ref[...]
    if activation == "silu":
        acc = acc * jax.nn.sigmoid(acc)
    o_ref[...] = acc


def linear(x, w, b=None, activation="none", block_m=256):
    """y = act(x @ w + b); x: (..., K) f32, w: (K, N) (bf16 or f32), b: (1, N)."""
    *lead, K = x.shape
    N = w.shape[1]
    M = int(np.prod(lead)) if lead else 1
    x2 = x.reshape(M, K)
    tm = M if M <= block_m else block_m
    grid = (pl.cdiv(M, tm),)
    in_specs = [pl.BlockSpec((tm, K), lambda i: (i, 0)),
                pl.BlockSpec((K, N), lambda i: (0, 0))]
    args = [x2, w]
    if b is not None:
        in_specs.append(pl.BlockSpec((1, N), lambda i: (0, 0)))
        args.append(b)
    out = pl.pallas_call(
        functools.partial(_linear_kernel, activation=activation,
                          has_bias=b is not None),
        grid=grid,
        in_specs=in_specs,
        out_specs=pl.BlockSpec((tm, N), lambda i: (i, 0)),
        out_shape=jax.ShapeDtypeStruct((M, N), jnp.float32),
        compiler_params=pltpu.CompilerParams(dimension_semantics=("parallel",)),
    )(*args)
    return out.reshape(*lead, N)


def _ln_linear_kernel(x_ref, lw_ref, lb_ref, w_ref, b_ref, o_ref, *, eps):
    x = x_ref[...]
    mu = jnp.mean(x, axis=-1, keepdims=True)
    xc = x - mu
    var = jnp.mean(xc * xc, axis=-1, keepdims=True)
    xn = xc * jax.lax.rsqrt(var + eps) * lw_ref[...] + lb_ref[...]
    o_ref[...] = jnp.dot(xn.astype(w_ref.dtype), w_ref[...],
                         preferred_element_type=jnp.float32) + b_ref[...]


def ln_linear(x, lw, lb, w, b, eps=1e-5, block_m=256):
    """Fused LayerNorm followed by a Linear (used by the decoder FeedForward)."""
    *lead, D = x.shape
    N = w.shape[1]
    M = int(np.prod(lead))
    tm = M if M <= block_m else block_m
    out = pl.pallas_call(
        functools.partial(_ln_linear_kernel, eps=eps),
        grid=(pl.cdiv(M, tm),),
        in_specs=[pl.BlockSpec((tm, D), lambda i: (i, 0)),
                  pl.BlockSpec((1, D), lambda i: (0, 0)),
                  pl.BlockSpec((1, D), lambda i: (0, 0)),
                  pl.BlockSpec((D, N), lambda i: (0, 0)),
                  pl.BlockSpec((1, N), lambda i: (0, 0))],
        out_specs=pl.BlockSpec((tm, N), lambda i: (i, 0)),
        out_shape=jax.ShapeDtypeStruct((M, N), jnp.float32),
        compiler_params=pltpu.CompilerParams(dimension_semantics=("parallel",)),
    )(x.reshape(M, D), lw, lb, w, b)
    return out.reshape(*lead, N)


def _add_rmsnorm_kernel(h_ref, r_ref, w_ref, o_ref, *, eps):
    res = h_ref[...] + r_ref[...]                    # residual_in_fp32
    var = jnp.mean(res * res, axis=-1, keepdims=True)
    o_ref[...] = res * jax.lax.rsqrt(var + eps) * w_ref[...]


def add_rms_norm(h, r, w, eps, block_m=256):
    """Final fused residual-add + RMSNorm (prenorm=False path)."""
    B, L, D = h.shape
    M = B * L
    tm = M if M <= block_m else block_m
    out = pl.pallas_call(
        functools.partial(_add_rmsnorm_kernel, eps=eps),
        grid=(pl.cdiv(M, tm),),
        in_specs=[pl.BlockSpec((tm, D), lambda i: (i, 0)),
                  pl.BlockSpec((tm, D), lambda i: (i, 0)),
                  pl.BlockSpec((1, D), lambda i: (0, 0))],
        out_specs=pl.BlockSpec((tm, D), lambda i: (i, 0)),
        out_shape=jax.ShapeDtypeStruct((M, D), jnp.float32),
        compiler_params=pltpu.CompilerParams(dimension_semantics=("parallel",)),
    )(h.reshape(M, D), r.reshape(M, D), w)
    return out.reshape(B, L, D)


# ----------------------------------------------------------------------------
# Fused Mamba block kernel (one pallas_call per layer, grid over batch)
# ----------------------------------------------------------------------------

def _mamba_block_kernel(*refs, eps, has_residual):
    if has_residual:
        (hid_ref, res_in_ref, nw_ref, wx_ref, wz_ref, cw_ref, cb_ref,
         wdtl_ref, wdt_ref, dtb_ref, wb_ref, wc_ref, at_ref, dsk_ref, wo_ref,
         out_ref, res_out_ref,
         xpad, dscr, duscr, bscr, cscr, yscr, hscr) = refs
    else:
        (hid_ref, nw_ref, wx_ref, wz_ref, cw_ref, cb_ref,
         wdtl_ref, wdt_ref, dtb_ref, wb_ref, wc_ref, at_ref, dsk_ref, wo_ref,
         out_ref, res_out_ref,
         xpad, dscr, duscr, bscr, cscr, yscr, hscr) = refs
        res_in_ref = None

    L = hid_ref.shape[1]
    d_conv = cw_ref.shape[0]
    S = at_ref.shape[0]
    C = at_ref.shape[1]

    # fused residual add + RMSNorm (prenorm=True), residual kept in fp32
    h_in = hid_ref[0]
    if has_residual:
        res = h_in + res_in_ref[0]
    else:
        res = h_in
    res_out_ref[0] = res
    var = jnp.mean(res * res, axis=-1, keepdims=True)
    hs = res * jax.lax.rsqrt(var + eps) * nw_ref[...]

    # in_proj (split into x / z halves to avoid in-kernel lane slicing)
    hs16 = hs.astype(wx_ref.dtype)
    x_pre = jnp.dot(hs16, wx_ref[...], preferred_element_type=jnp.float32)   # (L, C)
    z = jnp.dot(hs16, wz_ref[...], preferred_element_type=jnp.float32)       # (L, C)

    # depthwise causal conv1d + bias + SiLU, padding done in VMEM scratch
    xpad[0:d_conv - 1, :] = jnp.zeros((d_conv - 1, C), jnp.float32)
    xpad[d_conv - 1:, :] = x_pre
    acc = cb_ref[...]
    for k in range(d_conv):                                # static (d_conv = 4)
        acc = acc + xpad[k:k + L, :] * cw_ref[k:k + 1, :]
    u = acc * jax.nn.sigmoid(acc)                          # (L, C)

    # dt / B / C projections (dt kept low-rank: two chained small matmuls)
    dt_low = jnp.dot(u, wdtl_ref[...], preferred_element_type=jnp.float32)   # (L, R)
    dt = jnp.dot(dt_low, wdt_ref[...], preferred_element_type=jnp.float32) + dtb_ref[...]
    sp = jnp.log(1.0 + jnp.exp(jnp.minimum(dt, 20.0)))
    delta = jnp.where(dt > 20.0, dt, sp)                   # softplus (torch threshold)

    # hoisted, vectorized-over-L elementwise terms for the scan
    dscr[...] = delta
    duscr[...] = delta * u
    bscr[...] = jnp.dot(u, wb_ref[...], preferred_element_type=jnp.float32)  # (L, S)
    cscr[...] = jnp.dot(u, wc_ref[...], preferred_element_type=jnp.float32)  # (L, S)
    hscr[...] = jnp.zeros(hscr.shape, hscr.dtype)

    at = at_ref[...]                                       # (S, C) == A^T (negative)
    ii = jax.lax.broadcasted_iota(jnp.int32, (S, S), 0)
    jj = jax.lax.broadcasted_iota(jnp.int32, (S, S), 1)
    eye = (ii == jj).astype(jnp.float32)                   # lane -> sublane mover

    def scan_step(t, carry):
        d_t = dscr[pl.ds(t, 1), :]                         # (1, C)
        du_t = duscr[pl.ds(t, 1), :]                       # (1, C)
        b_t = bscr[pl.ds(t, 1), :]                         # (1, S)
        c_t = cscr[pl.ds(t, 1), :]                         # (1, S)
        b_col = jnp.sum(eye * b_t, axis=1, keepdims=True)  # (S, 1)
        h_new = jnp.exp(d_t * at) * hscr[...] + b_col * du_t
        hscr[...] = h_new
        yscr[pl.ds(t, 1), :] = jnp.dot(c_t, h_new, preferred_element_type=jnp.float32)
        return carry

    jax.lax.fori_loop(0, L, scan_step, 0)

    # skip connection, gate, out projection; single dense (L, D) store
    y = yscr[...] + dsk_ref[...] * u
    y = y * (z * jax.nn.sigmoid(z))
    out_ref[0] = jnp.dot(y.astype(wo_ref.dtype), wo_ref[...],
                         preferred_element_type=jnp.float32)


def mamba_block(lp, hidden, residual, eps):
    B, L, D = hidden.shape
    C = lp["wx"].shape[1]
    S = lp["AT"].shape[0]
    R = lp["wdt_low"].shape[1]
    K = lp["conv_w"].shape[0]
    has_residual = residual is not None

    act_spec = pl.BlockSpec((1, L, D), lambda b: (b, 0, 0))

    def wspec(shape):
        return pl.BlockSpec(shape, lambda b, _s=shape: (0,) * len(_s))

    in_specs = [act_spec] + ([act_spec] if has_residual else []) + [
        wspec((1, D)), wspec((D, C)), wspec((D, C)),
        wspec((K, C)), wspec((1, C)),
        wspec((C, R)), wspec((R, C)), wspec((1, C)),
        wspec((C, S)), wspec((C, S)),
        wspec((S, C)), wspec((1, C)),
        wspec((C, D)),
    ]
    args = [hidden] + ([residual] if has_residual else []) + [
        lp["norm_w"], lp["wx"], lp["wz"], lp["conv_w"], lp["conv_b"],
        lp["wdt_low"], lp["dt_w"], lp["dt_b"], lp["wb"], lp["wc"],
        lp["AT"], lp["D_skip"], lp["wo"],
    ]

    out, res = pl.pallas_call(
        functools.partial(_mamba_block_kernel, eps=eps, has_residual=has_residual),
        grid=(B,),
        in_specs=in_specs,
        out_specs=(act_spec, act_spec),
        out_shape=(jax.ShapeDtypeStruct((B, L, D), jnp.float32),
                   jax.ShapeDtypeStruct((B, L, D), jnp.float32)),
        scratch_shapes=[
            pltpu.VMEM((L + K - 1, C), jnp.float32),   # padded conv input
            pltpu.VMEM((L, C), jnp.float32),           # softplus(dt)
            pltpu.VMEM((L, C), jnp.float32),           # delta * u
            pltpu.VMEM((L, S), jnp.float32),           # B rows
            pltpu.VMEM((L, S), jnp.float32),           # C rows
            pltpu.VMEM((L, C), jnp.float32),           # y accumulator
            pltpu.VMEM((S, C), jnp.float32),           # SSM hidden state (f32)
        ],
        compiler_params=pltpu.CompilerParams(
            dimension_semantics=("parallel",),
            vmem_limit_bytes=48 * 1024 * 1024),
    )(*args)
    return out, res


# ----------------------------------------------------------------------------
# Fused decoder cross-attention kernel (single head; n_cross == 1)
# ----------------------------------------------------------------------------

def _cross_attn_kernel(x_ref, c_ref, nw_ref, nb_ref, cw_ref, cb_ref,
                       wq_ref, wk_ref, wv_ref, wo_ref, bo_ref, o_ref,
                       *, scale, eps):
    def ln(v, w, b):
        mu = jnp.mean(v, axis=-1, keepdims=True)
        vc = v - mu
        var = jnp.mean(vc * vc, axis=-1, keepdims=True)
        return vc * jax.lax.rsqrt(var + eps) * w + b

    xn = ln(x_ref[0], nw_ref[...], nb_ref[...])
    cn = ln(c_ref[0], cw_ref[...], cb_ref[...])
    q = jnp.dot(xn.astype(wq_ref.dtype), wq_ref[...], preferred_element_type=jnp.float32)
    k = jnp.dot(cn.astype(wk_ref.dtype), wk_ref[...], preferred_element_type=jnp.float32)
    v = jnp.dot(cn.astype(wv_ref.dtype), wv_ref[...], preferred_element_type=jnp.float32)
    sim = jax.lax.dot_general(q, k, (((1,), (1,)), ((), ())),
                              preferred_element_type=jnp.float32) * scale
    m = jnp.max(sim, axis=-1, keepdims=True)
    p = jnp.exp(sim - m)
    attn = p / jnp.sum(p, axis=-1, keepdims=True)
    o = jnp.dot(attn, v, preferred_element_type=jnp.float32)
    o_ref[0] = jnp.dot(o.astype(wo_ref.dtype), wo_ref[...],
                       preferred_element_type=jnp.float32) + bo_ref[...]


def cross_attention(p, x, context):
    # TODO(synk): n_cross > 1 would need an extra head reshape around the kernel.
    B, L, D = x.shape
    Lc = context.shape[1]
    inner = p["to_q_w"].shape[1]

    def wspec(shape):
        return pl.BlockSpec(shape, lambda b, _s=shape: (0,) * len(_s))

    return pl.pallas_call(
        functools.partial(_cross_attn_kernel, scale=p["scale"], eps=1e-5),
        grid=(B,),
        in_specs=[pl.BlockSpec((1, L, D), lambda b: (b, 0, 0)),
                  pl.BlockSpec((1, Lc, D), lambda b: (b, 0, 0)),
                  wspec((1, D)), wspec((1, D)), wspec((1, D)), wspec((1, D)),
                  wspec((D, inner)), wspec((D, inner)), wspec((D, inner)),
                  wspec((inner, D)), wspec((1, D))],
        out_specs=pl.BlockSpec((1, L, D), lambda b: (b, 0, 0)),
        out_shape=jax.ShapeDtypeStruct((B, L, D), jnp.float32),
        compiler_params=pltpu.CompilerParams(dimension_semantics=("parallel",)),
    )(x, context, p["norm_w"], p["norm_b"], p["norm_ctx_w"], p["norm_ctx_b"],
      p["to_q_w"], p["to_k_w"], p["to_v_w"], p["to_out_w"], p["to_out_b"])


def feed_forward(p, x):
    h = ln_linear(x, p["norm_w"], p["norm_b"], p["w1"], p["b1"])
    a, g = jnp.split(h, 2, axis=-1)
    # TODO(synk): GEGLU's exact-erf GELU gate stays in plain JAX (erf lowering
    # in Mosaic is not relied upon); both surrounding matmuls run in Pallas.
    h = a * jax.nn.gelu(g, approximate=False)
    return linear(h, p["w2"], p["b2"])


# ----------------------------------------------------------------------------
# Model glue
# ----------------------------------------------------------------------------

def point_embed(pe, x):
    # Sinusoidal feature construction against a constant basis is kept in plain
    # JAX (positional-encoding prep); the learned projection runs in Pallas.
    proj = jnp.einsum("bnd,de->bne", x, pe["basis"])
    feat = jnp.concatenate([jnp.sin(proj), jnp.cos(proj), x], axis=-1)
    return linear(feat, pe["w"], pe["b"])


def positional_embedding(t, num_channels, max_positions=10000):
    half = num_channels // 2
    freqs = jnp.arange(half, dtype=jnp.float32) / half
    freqs = (1.0 / max_positions) ** freqs
    x = t.astype(jnp.float32)[:, None] * freqs[None, :]
    return jnp.concatenate([jnp.cos(x), jnp.sin(x)], axis=1)


def embed_mash(params, cfg, mash_params):
    mask_dim = 2 * cfg["mask_degree"] + 1
    r = point_embed(params["rotation_embed"], mash_params[:, :, :3])
    p = point_embed(params["position_embed"], mash_params[:, :, 3:6])
    m = point_embed(params["mask_embed"], mash_params[:, :, 6:6 + mask_dim])
    s = point_embed(params["sh_embed"], mash_params[:, :, 6 + mask_dim:])
    return jnp.concatenate([r, p, m, s], axis=2)


def forward_condition(params, cfg, mash_params, condition, t):
    mash_emb = embed_mash(params, cfg, mash_params)                  # (B, N, D)
    t_feat = positional_embedding(t, cfg["d_t"])[:, None, :]         # (B, 1, d_t)
    t_emb = linear(t_feat, params["map_layer0_w"], params["map_layer0_b"], activation="silu")
    t_emb = linear(t_emb, params["map_layer1_w"], params["map_layer1_b"], activation="silu")
    hidden = jnp.concatenate([t_emb, condition, mash_emb], axis=1)   # (B, N+2, D)

    residual = None
    for lp in params["layers"]:
        hidden, residual = mamba_block(lp, hidden, residual, cfg["norm_eps"])

    # final fused add + RMSNorm (prenorm=False)
    hidden = add_rms_norm(hidden, residual, params["norm_f_w"], cfg["norm_eps"])

    latents = cross_attention(params["cross_attn"], hidden, condition)
    latents = latents + feed_forward(params["ff"], latents)

    lat_t = jnp.transpose(latents, (0, 2, 1))                        # (B, D, N+2)
    fused = linear(lat_t, params["fuse_w"], params["fuse_b"])        # fuse_channel
    latents = jnp.transpose(fused, (0, 2, 1))                        # (B, N, D)
    return linear(latents, params["to_out_w"], params["to_out_b"])


def mash_ssm_forward(params, cfg, mash_params, condition, t, condition_drop_prob, rng):
    if condition.dtype == jnp.float32:
        zero_emb = params["category_emb"][0][None, None, :]
        condition = condition + 0.0 * zero_emb
    else:
        condition = params["category_emb"][condition][:, None, :]
    # TODO(synk): torch.bernoulli dropout mask is host-side RNG; done in plain JAX.
    context_mask = jax.random.bernoulli(rng, p=1.0 - condition_drop_prob,
                                        shape=condition.shape).astype(jnp.float32)
    condition = condition * context_mask
    return forward_condition(params, cfg, mash_params, condition, t)


# ----------------------------------------------------------------------------
# Deterministic synthetic parameter init (weights pre-cast / pre-shaped)
# ----------------------------------------------------------------------------

def _dense(key, fan_in, fan_out, scale=0.02, dtype=jnp.float32):
    w = scale * jax.random.normal(key, (fan_in, fan_out), dtype=jnp.float32)
    return w.astype(dtype)


def _point_embed_params(key, in_dim, hidden_dim, out_dim):
    nf = max(hidden_dim // (2 * in_dim), 1)
    freqs = (2.0 ** np.arange(nf, dtype=np.float32)) * np.pi
    basis = np.zeros((in_dim, in_dim * nf), np.float32)
    for c in range(in_dim):
        basis[c, c * nf:(c + 1) * nf] = freqs
    feat_dim = 2 * in_dim * nf + in_dim
    return dict(basis=jnp.asarray(basis),
                w=_dense(key, feat_dim, out_dim, dtype=jnp.bfloat16),
                b=jnp.zeros((1, out_dim), jnp.float32))


def init_params(key, cfg):
    D = cfg["d_hidden"]
    assert D % 4 == 0
    mask_dim = 2 * cfg["mask_degree"] + 1
    sh_dim = (cfg["sh_degree"] + 1) ** 2
    d_inner = cfg["expand"] * D
    S = cfg["d_state"]
    dt_rank = math.ceil(D / 16)
    out_dim = 6 + mask_dim + sh_dim
    seq_len = cfg["n_anchor"] + 2
    inner_attn = cfg["n_cross"] * D                      # heads=n_cross, dim_head=D

    keys = iter(jax.random.split(key, 64 + 16 * cfg["n_layer"]))
    nk = lambda: next(keys)

    params = {}
    params["rotation_embed"] = _point_embed_params(nk(), 3, cfg["d_hidden_embed"], D // 4)
    params["position_embed"] = _point_embed_params(nk(), 3, cfg["d_hidden_embed"], D // 4)
    params["mask_embed"] = _point_embed_params(nk(), mask_dim, cfg["d_hidden_embed"], D // 4)
    params["sh_embed"] = _point_embed_params(nk(), sh_dim, cfg["d_hidden_embed"], D // 4)
    params["map_layer0_w"] = _dense(nk(), cfg["d_t"], D, dtype=jnp.bfloat16)
    params["map_layer0_b"] = jnp.zeros((1, D), jnp.float32)
    params["map_layer1_w"] = _dense(nk(), D, D, dtype=jnp.bfloat16)
    params["map_layer1_b"] = jnp.zeros((1, D), jnp.float32)
    params["category_emb"] = 0.02 * jax.random.normal(nk(), (55, cfg["d_cond"]), jnp.float32)

    layers = []
    for _ in range(cfg["n_layer"]):
        layers.append(dict(
            norm_w=jnp.ones((1, D), jnp.float32),
            wx=_dense(nk(), D, d_inner, dtype=jnp.bfloat16),          # in_proj (x half)
            wz=_dense(nk(), D, d_inner, dtype=jnp.bfloat16),          # in_proj (z half)
            conv_w=0.2 * jax.random.normal(nk(), (cfg["d_conv"], d_inner), jnp.float32),
            conv_b=jnp.zeros((1, d_inner), jnp.float32),
            wdt_low=_dense(nk(), d_inner, dt_rank),                   # x_proj (dt part)
            dt_w=_dense(nk(), dt_rank, d_inner),
            dt_b=jnp.full((1, d_inner), math.log(math.expm1(0.01)), jnp.float32),
            wb=_dense(nk(), d_inner, S),                              # x_proj (B part)
            wc=_dense(nk(), d_inner, S),                              # x_proj (C part)
            AT=-jnp.tile(jnp.arange(1, S + 1, dtype=jnp.float32)[:, None], (1, d_inner)),
            D_skip=jnp.ones((1, d_inner), jnp.float32),
            wo=_dense(nk(), d_inner, D, dtype=jnp.bfloat16),
        ))
    params["layers"] = layers
    params["norm_f_w"] = jnp.ones((1, D), jnp.float32)

    params["cross_attn"] = dict(
        norm_w=jnp.ones((1, D), jnp.float32), norm_b=jnp.zeros((1, D), jnp.float32),
        norm_ctx_w=jnp.ones((1, D), jnp.float32), norm_ctx_b=jnp.zeros((1, D), jnp.float32),
        to_q_w=_dense(nk(), D, inner_attn, dtype=jnp.bfloat16),
        to_k_w=_dense(nk(), D, inner_attn, dtype=jnp.bfloat16),
        to_v_w=_dense(nk(), D, inner_attn, dtype=jnp.bfloat16),
        to_out_w=_dense(nk(), inner_attn, D, dtype=jnp.bfloat16),
        to_out_b=jnp.zeros((1, D), jnp.float32),
        scale=float(D) ** -0.5,                          # dim_head = d_hidden
    )
    mult = 4
    params["ff"] = dict(
        norm_w=jnp.ones((1, D), jnp.float32), norm_b=jnp.zeros((1, D), jnp.float32),
        w1=_dense(nk(), D, D * mult * 2, dtype=jnp.bfloat16),
        b1=jnp.zeros((1, D * mult * 2), jnp.float32),
        w2=_dense(nk(), D * mult, D, dtype=jnp.bfloat16),
        b2=jnp.zeros((1, D), jnp.float32),
    )
    params["fuse_w"] = _dense(nk(), seq_len, cfg["n_anchor"], dtype=jnp.bfloat16)
    params["fuse_b"] = jnp.zeros((1, cfg["n_anchor"]), jnp.float32)
    params["to_out_w"] = _dense(nk(), D, out_dim, dtype=jnp.bfloat16)
    params["to_out_b"] = jnp.zeros((1, out_dim), jnp.float32)
    return params


# ----------------------------------------------------------------------------
# Demo
# ----------------------------------------------------------------------------

if __name__ == "__main__":
    cfg = dict(mask_degree=3, sh_degree=2, d_hidden=64, d_hidden_embed=48,
               d_cond=64, d_t=32, n_layer=2, n_cross=1,
               d_state=16, d_conv=4, expand=2, n_anchor=8, norm_eps=1e-5)
    mask_dim = 2 * cfg["mask_degree"] + 1
    sh_dim = (cfg["sh_degree"] + 1) ** 2
    param_dim = 6 + mask_dim + sh_dim                    # 22

    root = jax.random.PRNGKey(0)
    k_params, k_mash, k_cond, k_t, k_drop = jax.random.split(root, 5)
    params = init_params(k_params, cfg)

    batch = 2
    mash_params = jax.random.normal(k_mash, (batch, cfg["n_anchor"], param_dim), jnp.float32)
    condition = jax.random.normal(k_cond, (batch, 1, cfg["d_cond"]), jnp.float32)
    t = jax.random.uniform(k_t, (batch,), jnp.float32)

    out = mash_ssm_forward(params, cfg, mash_params, condition, t,
                           condition_drop_prob=0.0, rng=k_drop)
    out = jax.block_until_ready(out)
    assert out.shape == (batch, cfg["n_anchor"], param_dim), out.shape
    assert bool(jnp.all(jnp.isfinite(out)))
    print("KERNEL_OK")
</pallas_src>

<mosaic_0001>
module attributes {stable_mosaic.version = 11 : i64} {
  func.func @_linear_kernel(%arg0: i32, %arg1: memref<16x51xf32, #tpu.memory_space<vmem>>, %arg2: memref<51x16xbf16, #tpu.memory_space<vmem>>, %arg3: memref<1x16xf32, #tpu.memory_space<vmem>>, %arg4: memref<16x16xf32, #tpu.memory_space<vmem>>) attributes {dimension_semantics = [#tpu.dimension_semantics<parallel>], iteration_bounds = array<i64: 1>, scalar_prefetch = 0 : i64, scratch_operands = 0 : i64, tpu.core_type = #tpu.core_type<tc>, window_params = [{transform_indices = @transform_0, window_bounds = array<i64: 16, 51>}, {pipeline_mode = #tpu.pipeline_mode<synchronous>, transform_indices = @transform_1, window_bounds = array<i64: 51, 16>}, {pipeline_mode = #tpu.pipeline_mode<synchronous>, transform_indices = @transform_2, window_bounds = array<i64: 1, 16>}, {transform_indices = @transform_3, window_bounds = array<i64: 16, 16>}]} {
    %c0 = arith.constant 0 : index
    %c0_0 = arith.constant 0 : index
    %0 = vector.load %arg1[%c0, %c0_0] : memref<16x51xf32, #tpu.memory_space<vmem>>, vector<16x51xf32>
    %1 = arith.truncf %0 : vector<16x51xf32> to vector<16x51xbf16>
    %c0_1 = arith.constant 0 : index
    %c0_2 = arith.constant 0 : index
    %2 = vector.load %arg2[%c0_1, %c0_2] : memref<51x16xbf16, #tpu.memory_space<vmem>>, vector<51x16xbf16>
    %cst = arith.constant dense<0.000000e+00> : vector<16x16xf32>
    %3 = tpu.matmul %1, %2, %cst {dimension_numbers = #tpu.dot_dimension_numbers<[1], [0], [0], [1], [0, 0, 1, 1], [], []>} : vector<16x51xbf16>, vector<51x16xbf16>, vector<16x16xf32> -> vector<16x16xf32>
    %c0_3 = arith.constant 0 : index
    %c0_4 = arith.constant 0 : index
    %4 = vector.load %arg3[%c0_3, %c0_4] : memref<1x16xf32, #tpu.memory_space<vmem>>, vector<1x16xf32>
    %5 = vector.broadcast %4 : vector<1x16xf32> to vector<16x16xf32>
    %6 = arith.addf %3, %5 : vector<16x16xf32>
    %c0_5 = arith.constant 0 : index
    %c0_6 = arith.constant 0 : index
    %7 = vector.load %arg4[%c0_5, %c0_6] : memref<16x16xf32, #tpu.memory_space<vmem>>, vector<16x16xf32>
    tpu.vector_store %arg4[%c0_5, %c0_6], %6 {strides = array<i32>} : memref<16x16xf32, #tpu.memory_space<vmem>>, vector<16x16xf32>,
    return
  }
  func.func @transform_0(%arg0: i32) -> (i32, i32) {
    %c0_i32 = arith.constant 0 : i32
    %c0_i32_0 = arith.constant 0 : i32
    return %arg0, %c0_i32 : i32, i32
  }
  func.func @transform_1(%arg0: i32) -> (i32, i32) {
    %c0_i32 = arith.constant 0 : i32
    %c0_i32_0 = arith.constant 0 : i32
    %c0_i32_1 = arith.constant 0 : i32
    return %c0_i32, %c0_i32_0 : i32, i32
  }
  func.func @transform_2(%arg0: i32) -> (i32, i32) {
    %c0_i32 = arith.constant 0 : i32
    %c0_i32_0 = arith.constant 0 : i32
    %c0_i32_1 = arith.constant 0 : i32
    return %c0_i32, %c0_i32_0 : i32, i32
  }
  func.func @transform_3(%arg0: i32) -> (i32, i32) {
    %c0_i32 = arith.constant 0 : i32
    %c0_i32_0 = arith.constant 0 : i32
    return %arg0, %c0_i32 : i32, i32
  }
}

</mosaic_0001>

<bundles_post_ra>
// kernel: tpu_custom_call.1
= control target key start
LH: loop header
LB: loop body
LE: loop exit
PB: predicated region body
PF: predicated region fallthrough
CT: control target
= control target key end

     0   :  { %v180_v1 = vmov 0.0   ;;  %vm58_vm0 = vcmask 1040384   ;;  %vm59_vm1 = vcmask 1041408   ;;  %v181_v2 = vmov 65535   ;;  %s230_s0 = inlined_call_operand.vmem [shape: f32[16,51], index: 0, kind: input, shape index: {}]   ;;  %s231_s1 = inlined_call_operand.vmem [shape: bf16[51,16], index: 1, kind: input, shape index: {}]   ;;  %s232_s2 = inlined_call_operand.vmem [shape: f32[1,16], index: 2, kind: input, shape index: {}]   ;;  %s233_s3 = inlined_call_operand.hbm [shape: f32[16,16], index: 3, kind: output, shape index: {}]  }
   0x1   :  { %v154_v0 = vld [vmem:[%s231_s1 + $0x18] ss:$0 sps:$4 sm:$0x33]   ;;  %136 = vmatprep.subr.bf16.mxu0 %v180_v1  ;;  %v60_v3 = vsel %vm58_vm0, 4294967295, %v181_v2  ;;  %vm182_vm2 = vmmov 0  }
   0x2   :  { %v61_v4 = vsel %vm59_vm1, %v60_v3, 0  ;;  %144 = vmatprep.mubr.msk.bf16.mxu0 %vm182_vm2, %v180_v1 }
   0x3   :  { %v63_v5 = vand.u32 %v154_v0, %v61_v4 }
   0x4   :  { %8 = vsyncpa [#allocation3], 0  ;;  %v155_v6 = vld [vmem:[%s231_s1 + $0x10] sm:$0xff]   ;;  %v156_v7 = vld [vmem:[%s231_s1 + $0x8] sm:$0xff]   ;;  %vm54_vm3 = vcmask 416768   ;;  %vm106_vm4 = vcmask 130048  }
   0x5   :  { %137 = vmatpush3.bf16.msra.mxu0 %v63_v5  ;;  %v157_v8 = vld [vmem:[%s231_s1] sm:$0xff]   ;;  %v17_v10 = vld [vmem:[%s230_s0 + $0x8] sm:$0xff]  ;;  %s183_s1 = smov [#allocation2]  }
   0x6   :  { %138 = vmatprep.subr.bf16.mxu0 %v180_v1  ;;  %v16_v9 = vld [vmem:[%s230_s0] sm:$0xff]  ;;  %s114_s26 = sshll.u32 %s183_s1, 4  ;;  %s115_s26 = int_to_ptr.vmem [resolvable:$true] %s114_s26 }
   0x7   :  { %v18_v11 = vpack.c.bf16 %v17_v10, %v16_v9  ;;  %v125_v12 = vld [vmem:[%s232_s2] ss:$0 sm:$0xff]  ;;  %s158_s0 = scalar_lea.vmem %s115_s26, 256  ;;  %p163_p1 = scmp.lt.s32.totalorder %s115_s26, %s115_s26 }
   0x8   :  { %p159_p0 = scmp.ne.s32.totalorder %s115_s26, %s158_s0  ;;  %p164_p2 = scmp.lt.s32.totalorder %s158_s0, %s158_s0 }
   0x9   :  { %139 = vmatpush3.bf16.msra.mxu0 %v155_v6 }
   0xa   :  { %140 = vmatprep.subr.bf16.mxu0 %v180_v1  ;;  %p165_p3 = por %p164_p2, %p163_p1 }
   0xc   :  { %p166_p4 = pnand %p165_p3, %p159_p0 }
   0xd   :  { %141 = vmatpush3.bf16.msra.mxu0 %v156_v7 }
   0xe   :  { %142 = vmatprep.subr.bf16.mxu0 %v180_v1 }
  0x11   :  { %143 = vmatpush3.bf16.msra.mxu0 %v157_v8 }
  0x14   :  { %145 = vmatmul.mubr.msk.bf16.vlgmr.msra.gmra.mxu0 %vm54_vm3, %v18_v11 }
  0xd4   :  { %v99_v13 = vpop.f32.mrf.mxu0 }
  0xd5   :  { %v100_v14 = vadd.f32 %v125_v12, %v99_v13 }
  0xd6   :  { %v146_v15 = vpop.f32.mrf.mxu0 }
  0xd7   :  { %107 = vst.msk [vmem:[#allocation2] sm:$0xff] %vm106_vm4, %v100_v14 }
  0xd8   :  { %v102_v16 = vpop.f32.mrf.mxu0 }
  0xd9   :  { %v103_v17 = vadd.f32 %v125_v12, %v102_v16 }
  0xda   :  { %v147_v18 = vpop.f32.mrf.mxu0 }
  0xdb   :  { %108 = vst.msk [vmem:[#allocation2 + $0x8] sm:$0xff] %vm106_vm4, %v103_v17 }
  0xdc   :  { %169 = shalt.err (!%p166_p4)
}
  0xdd   :  { %s184_s2 = smov 128   ;;  %s185_s27 = smov 8  }
  0xde   :  { %120 = dma.vmem_to_hbm [thread:$0]  %s115_s26, 256, %s233_s3, [#allocation3], %s184_s2, %s184_s2, %s185_s27  }
  0xdf   :  { %178 = dma.done.wait [#allocation3], 256  }
  0xe0   :  { %179 = vsyncadd [#allocation3], 4294967040 }
  0xe1   :  { %124 = vsyncpa [#allocation3], 1 }

</bundles_post_ra>
